<compile_context>
chip_gen: v7x
topology: tpu7x:2x2x1
jax: 0.10.0
libtpu: 0.0.40
codegen_flags: <defaults>
</compile_context>

<pallas_src>
import functools

import jax
import jax.numpy as jnp
from jax.experimental import pallas as pl
from jax.experimental.pallas import tpu as pltpu


def _round_up(x, m):
    return (x + m - 1) // m * m


def _pick_hp_tile(hp):
    """Largest multiple of 128 that divides hp, capped at 512."""
    best = 128
    for cand in range(128, min(hp, 512) + 1, 128):
        if hp % cand == 0:
            best = cand
    return best


def _minlstm_kernel(x_ref, w_ref, b_ref, tril_ref, *rest, hpt, with_h0):
    """One (batch, hidden-tile) grid step: x (T, D) -> hidden (T, hpt)."""
    if with_h0:
        h0_ref, out_ref = rest
    else:
        h0_ref = None
        (out_ref,) = rest

    x = x_ref[0]                                   # (T, D)   bf16 (or f32)
    T = x.shape[0]

    # Fused projection for this hidden tile: [forget | input | candidate].
    # bf16 x bf16 -> f32 accumulate on the MXU; f32 bias added afterwards.
    proj = jnp.dot(x, w_ref[...], preferred_element_type=jnp.float32) + b_ref[...]
    f_pre = proj[:, 0 * hpt:1 * hpt]               # (T, hpt), lane-aligned slices
    i_pre = proj[:, 1 * hpt:2 * hpt]
    cand = proj[:, 2 * hpt:3 * hpt]

    forget_gate = jax.nn.sigmoid(f_pre)
    input_gate = jax.nn.sigmoid(i_pre)
    # One approximate EUP reciprocal shared by both normalizations.
    inv_gate_sum = pl.reciprocal(forget_gate + input_gate + 1e-8, approx=True)
    forget_norm = forget_gate * inv_gate_sum
    input_norm = input_gate * inv_gate_sum

    new_information = input_norm * cand            # (T, hpt)
    mem_log = jnp.log(forget_norm + 1e-8)          # (T, hpt)

    tril = tril_ref[...]                           # (T, T) strictly-lower ones, f32

    # Exclusive / inclusive time-cumsum of mem_log via MXU (exact: 0/1 weights).
    log_prod_excl = jnp.dot(tril, mem_log,
                            preferred_element_type=jnp.float32)   # (T, hpt)
    log_prod = log_prod_excl + mem_log
    log_prod_last = log_prod[T - 1:T, :]           # (1, hpt) == L_T

    scaling_factor = jnp.exp(log_prod_last - log_prod_excl)       # exp(L_T - L_{t-1})
    adjusted = scaling_factor * new_information

    # Inclusive cumsum of adjusted contributions (exclusive matmul + self).
    hidden = jnp.dot(tril, adjusted,
                     preferred_element_type=jnp.float32) + adjusted
    if with_h0:
        hidden = hidden + jnp.exp(log_prod) * h0_ref[0]           # h0 term

    out_ref[0] = hidden.astype(out_ref.dtype)


def minlstm_forward(input_seq, params, initial_hidden=None, *,
                    hp_tile=None, matmul_dtype=jnp.bfloat16):
    """input_seq: (B, T, D) float32; returns hidden_states (B, T, H) float32."""
    B, T, D = input_seq.shape
    H = params["wf"].shape[0]
    Hp = _round_up(max(H, 128), 128)               # lane-dense hidden width
    if hp_tile is None:
        hp_tile = _pick_hp_tile(Hp)
    assert Hp % hp_tile == 0 and hp_tile % 128 == 0
    n_ht = Hp // hp_tile
    with_h0 = initial_hidden is not None
    mm_bytes = jnp.dtype(matmul_dtype).itemsize

    # --- fused, hidden-tiled weight layout: per tile h the columns are [f|i|c] ---
    def pad_wt(w):                                  # torch Linear W is (H, D)
        wt = w.T.astype(jnp.float32)                # (D, H)
        return jnp.pad(wt, ((0, 0), (0, Hp - H)))   # (D, Hp)

    def pad_b(b):
        return jnp.pad(b.astype(jnp.float32), (0, Hp - H))         # (Hp,)

    w_stk = jnp.stack([pad_wt(params["wf"]), pad_wt(params["wi"]),
                       pad_wt(params["wc"])], axis=0)               # (3, D, Hp)
    w_cat = (jnp.transpose(w_stk.reshape(3, D, n_ht, hp_tile), (1, 2, 0, 3))
             .reshape(D, n_ht * 3 * hp_tile)).astype(matmul_dtype)  # (D, 3*Hp)

    b_stk = jnp.stack([pad_b(params["bf"]), pad_b(params["bi"]),
                       pad_b(params["bc"])], axis=0)                 # (3, Hp)
    b_cat = (jnp.transpose(b_stk.reshape(3, n_ht, hp_tile), (1, 0, 2))
             .reshape(1, n_ht * 3 * hp_tile)).astype(jnp.float32)    # (1, 3*Hp)

    x = input_seq.astype(matmul_dtype)

    # Strictly-lower-triangular ones; grid-constant, single-buffered in VMEM.
    tril = jnp.tril(jnp.ones((T, T), jnp.float32), k=-1)

    in_specs = [
        pl.BlockSpec((1, T, D), lambda b, h: (b, 0, 0)),            # x per batch
        pl.BlockSpec((D, 3 * hp_tile), lambda b, h: (0, h)),        # weight tile
        pl.BlockSpec((1, 3 * hp_tile), lambda b, h: (0, h)),        # bias tile
        pl.BlockSpec(memory_space=pltpu.MemorySpace.VMEM),          # tril (no pipelining)
    ]
    inputs = [x, w_cat, b_cat, tril]
    if with_h0:
        h0 = jnp.pad(initial_hidden.astype(jnp.float32),
                     ((0, 0), (0, Hp - H))).reshape(B, 1, Hp)
        in_specs.append(pl.BlockSpec((1, 1, hp_tile), lambda b, h: (b, 0, h)))
        inputs.append(h0)

    grid_spec = pltpu.PrefetchScalarGridSpec(
        num_scalar_prefetch=0,
        grid=(B, n_ht),
        in_specs=in_specs,
        out_specs=pl.BlockSpec((1, T, hp_tile), lambda b, h: (b, 0, h)),
    )

    # Generation-aware VMEM cap (85% of physical; conservative fallback).
    try:
        phys_vmem = int(pltpu.get_tpu_info().vmem_capacity_bytes)
    except Exception:
        phys_vmem = 64 << 20
    vmem_cap = int(0.85 * phys_vmem)

    vmem_need = (
        2 * T * D * mm_bytes                      # x blocks (double-buffered)
        + 2 * D * 3 * hp_tile * mm_bytes          # weight blocks
        + 2 * 3 * hp_tile * 4                     # bias blocks
        + 2 * T * hp_tile * 4                     # output blocks
        + (2 * hp_tile * 4 if with_h0 else 0)     # h0 blocks
        + T * T * 4                               # tril (single copy)
        + T * 3 * hp_tile * 4                     # fused projection temp
        + 12 * T * hp_tile * 4                    # elementwise temporaries
    )
    vmem_limit = min(max(2 * vmem_need, 8 << 20), vmem_cap)

    cost = pl.CostEstimate(
        flops=int(2 * B * T * D * 3 * Hp + 4 * B * T * T * Hp),
        transcendentals=int((6 if with_h0 else 5) * B * T * Hp),
        bytes_accessed=int(x.size * mm_bytes + B * w_cat.size * mm_bytes
                           + B * b_cat.size * 4 + tril.size * 4
                           + (B * Hp * 4 if with_h0 else 0) + B * T * Hp * 4),
    )

    out = pl.pallas_call(
        functools.partial(_minlstm_kernel, hpt=hp_tile, with_h0=with_h0),
        out_shape=jax.ShapeDtypeStruct((B, T, Hp), jnp.float32),
        grid_spec=grid_spec,
        compiler_params=pltpu.CompilerParams(
            dimension_semantics=("parallel", "parallel"),
            vmem_limit_bytes=vmem_limit,
        ),
        cost_estimate=cost,
    )(*inputs)

    return out[:, :, :H]


def minlstm_reference(input_seq, params, initial_hidden=None,
                      matmul_dtype=jnp.float32):
    """Pure-JAX mirror of the PyTorch forward (for verification).

    `matmul_dtype=jnp.bfloat16` mimics the kernel's bf16-input / f32-accumulate
    projections so the kernel can be checked at a tight tolerance.
    """
    B, T, D = input_seq.shape
    H = params["wf"].shape[0]
    if initial_hidden is None:
        initial_hidden = jnp.zeros((B, H), dtype=jnp.float32)
    x = input_seq.astype(matmul_dtype)

    def lin(w, b):
        y = jnp.einsum("btd,hd->bth", x, w.astype(matmul_dtype),
                       preferred_element_type=jnp.float32)
        return y + b.astype(jnp.float32)

    f = jax.nn.sigmoid(lin(params["wf"], params["bf"]))
    i = jax.nn.sigmoid(lin(params["wi"], params["bi"]))
    gs = f + i + 1e-8
    fn = f / gs
    inn = i / gs
    cand = lin(params["wc"], params["bc"])
    new_info = inn * cand
    mlog = jnp.log(fn + 1e-8)
    L = jnp.cumsum(mlog, axis=1)
    padded = jnp.concatenate([jnp.zeros((B, 1, H), jnp.float32), L], axis=1)
    scaling = jnp.exp(L[:, -1:, :] - padded[:, :-1, :])
    adj = scaling * new_info
    hidden = jnp.cumsum(adj, axis=1)
    hidden = hidden + jnp.exp(L) * initial_hidden.astype(jnp.float32)[:, None, :]
    return hidden


def init_params(key, input_dim, hidden_dim):
    """Deterministic synthetic init (uniform like nn.Linear default)."""
    ks = jax.random.split(key, 6)
    bound = 1.0 / (input_dim ** 0.5)
    u = lambda k, s: jax.random.uniform(k, s, jnp.float32, -bound, bound)
    return {
        "wf": u(ks[0], (hidden_dim, input_dim)), "bf": u(ks[1], (hidden_dim,)),
        "wi": u(ks[2], (hidden_dim, input_dim)), "bi": u(ks[3], (hidden_dim,)),
        "wc": u(ks[4], (hidden_dim, input_dim)), "bc": u(ks[5], (hidden_dim,)),
    }


if __name__ == "__main__":
    key = jax.random.PRNGKey(0)
    k_x, k_p, k_h, k_x2, k_p2 = jax.random.split(key, 5)

    # --- Case 1: spec-sized shapes, explicit h0, single hidden tile ---
    B, T, D, H = 2, 8, 32, 32
    x = jax.random.normal(k_x, (B, T, D), dtype=jnp.float32)
    params = init_params(k_p, D, H)
    h0 = jax.random.normal(k_h, (B, H), dtype=jnp.float32)

    out = jax.block_until_ready(minlstm_forward(x, params, h0))
    assert out.shape == (B, T, H)

    # Tight check vs a reference that mirrors the kernel's bf16-input matmuls.
    ref_matched = jax.block_until_ready(
        minlstm_reference(x, params, h0, matmul_dtype=jnp.bfloat16))
    assert jnp.allclose(out, ref_matched, atol=1e-2, rtol=1e-2), \
        "mismatch vs matched-precision reference"
    # Looser sanity check vs the full-f32 PyTorch-equivalent numerics
    # (difference is bf16 weight/activation rounding in the projections).
    ref_f32 = jax.block_until_ready(minlstm_reference(x, params, h0))
    assert jnp.allclose(out, ref_f32, atol=1e-1, rtol=1e-1), \
        "mismatch vs f32 reference"

    # --- Case 2: multiple hidden tiles + h0=None specialization ---
    B2, T2, D2, H2 = 2, 16, 32, 256
    x2 = jax.random.normal(k_x2, (B2, T2, D2), dtype=jnp.float32)
    params2 = init_params(k_p2, D2, H2)
    out2 = jax.block_until_ready(minlstm_forward(x2, params2, None, hp_tile=128))
    assert out2.shape == (B2, T2, H2)
    ref2 = jax.block_until_ready(
        minlstm_reference(x2, params2, None, matmul_dtype=jnp.bfloat16))
    assert jnp.allclose(out2, ref2, atol=1e-2, rtol=1e-2), \
        "mismatch vs reference (multi hidden tile, h0=None)"

    print("KERNEL_OK")
</pallas_src>

<mosaic_0001>
module attributes {stable_mosaic.version = 11 : i64} {
  func.func @_minlstm_kernel(%arg0: i32, %arg1: i32, %arg2: memref<1x8x32xbf16, #tpu.memory_space<vmem>>, %arg3: memref<32x384xbf16, #tpu.memory_space<vmem>>, %arg4: memref<1x384xf32, #tpu.memory_space<vmem>>, %arg5: memref<8x8xf32, #tpu.memory_space<vmem>>, %arg6: memref<1x1x128xf32, #tpu.memory_space<vmem>>, %arg7: memref<1x8x128xf32, #tpu.memory_space<vmem>>) attributes {dimension_semantics = [#tpu.dimension_semantics<parallel>, #tpu.dimension_semantics<parallel>], iteration_bounds = array<i64: 2, 1>, scalar_prefetch = 0 : i64, scratch_operands = 0 : i64, tpu.core_type = #tpu.core_type<tc>, window_params = [{transform_indices = @transform_0, window_bounds = array<i64: 1, 8, 32>}, {transform_indices = @transform_1, window_bounds = array<i64: 32, 384>}, {transform_indices = @transform_2, window_bounds = array<i64: 1, 384>}, {pipeline_mode = #tpu.pipeline_mode<synchronous>, transform_indices = @transform_3, window_bounds = array<i64: 8, 8>}, {transform_indices = @transform_4, window_bounds = array<i64: 1, 1, 128>}, {transform_indices = @transform_5, window_bounds = array<i64: 1, 8, 128>}]} {
    %c0 = arith.constant 0 : index
    %c0_0 = arith.constant 0 : index
    %c0_1 = arith.constant 0 : index
    %0 = vector.load %arg2[%c0, %c0_0, %c0_1] : memref<1x8x32xbf16, #tpu.memory_space<vmem>>, vector<1x8x32xbf16>
    %1 = vector.shape_cast %0 : vector<1x8x32xbf16> to vector<8x32xbf16>
    %c0_2 = arith.constant 0 : index
    %c0_3 = arith.constant 0 : index
    %2 = vector.load %arg3[%c0_2, %c0_3] : memref<32x384xbf16, #tpu.memory_space<vmem>>, vector<32x384xbf16>
    %cst = arith.constant dense<0.000000e+00> : vector<8x384xf32>
    %3 = tpu.matmul %1, %2, %cst {dimension_numbers = #tpu.dot_dimension_numbers<[1], [0], [0], [1], [0, 0, 1, 1], [], []>} : vector<8x32xbf16>, vector<32x384xbf16>, vector<8x384xf32> -> vector<8x384xf32>
    %c0_4 = arith.constant 0 : index
    %c0_5 = arith.constant 0 : index
    %4 = vector.load %arg4[%c0_4, %c0_5] : memref<1x384xf32, #tpu.memory_space<vmem>>, vector<1x384xf32>
    %5 = vector.broadcast %4 : vector<1x384xf32> to vector<8x384xf32>
    %6 = arith.addf %3, %5 : vector<8x384xf32>
    %7 = vector.extract_strided_slice %6 {offsets = [0, 0], sizes = [8, 128], strides = [1, 1]} : vector<8x384xf32> to vector<8x128xf32>
    %8 = vector.extract_strided_slice %6 {offsets = [0, 128], sizes = [8, 128], strides = [1, 1]} : vector<8x384xf32> to vector<8x128xf32>
    %9 = vector.extract_strided_slice %6 {offsets = [0, 256], sizes = [8, 128], strides = [1, 1]} : vector<8x384xf32> to vector<8x128xf32>
    %10 = arith.negf %7 : vector<8x128xf32>
    %11 = math.exp %10 : vector<8x128xf32>
    %cst_6 = arith.constant 1.000000e+00 : f32
    %12 = vector.broadcast %cst_6 : f32 to vector<8x128xf32>
    %13 = arith.addf %12, %11 : vector<8x128xf32>
    %14 = arith.divf %12, %13 : vector<8x128xf32>
    %15 = arith.negf %8 : vector<8x128xf32>
    %16 = math.exp %15 : vector<8x128xf32>
    %cst_7 = arith.constant 1.000000e+00 : f32
    %17 = vector.broadcast %cst_7 : f32 to vector<8x128xf32>
    %18 = arith.addf %17, %16 : vector<8x128xf32>
    %19 = arith.divf %17, %18 : vector<8x128xf32>
    %20 = arith.addf %14, %19 : vector<8x128xf32>
    %cst_8 = arith.constant 9.99999993E-9 : f32
    %21 = vector.broadcast %cst_8 : f32 to vector<8x128xf32>
    %22 = arith.addf %20, %21 : vector<8x128xf32>
    %23 = tpu.reciprocal %22 {approx = true} : vector<8x128xf32> -> vector<8x128xf32>
    %24 = arith.mulf %14, %23 : vector<8x128xf32>
    %25 = arith.mulf %19, %23 : vector<8x128xf32>
    %26 = arith.mulf %25, %9 : vector<8x128xf32>
    %cst_9 = arith.constant 9.99999993E-9 : f32
    %27 = vector.broadcast %cst_9 : f32 to vector<8x128xf32>
    %28 = arith.addf %24, %27 : vector<8x128xf32>
    %29 = math.log %28 : vector<8x128xf32>
    %c0_10 = arith.constant 0 : index
    %c0_11 = arith.constant 0 : index
    %30 = vector.load %arg5[%c0_10, %c0_11] : memref<8x8xf32, #tpu.memory_space<vmem>>, vector<8x8xf32>
    %cst_12 = arith.constant dense<0.000000e+00> : vector<8x128xf32>
    %31 = tpu.matmul %30, %29, %cst_12 {dimension_numbers = #tpu.dot_dimension_numbers<[1], [0], [0], [1], [0, 0, 1, 1], [], []>} : vector<8x8xf32>, vector<8x128xf32>, vector<8x128xf32> -> vector<8x128xf32>
    %32 = arith.addf %31, %29 : vector<8x128xf32>
    %33 = vector.extract_strided_slice %32 {offsets = [7, 0], sizes = [1, 128], strides = [1, 1]} : vector<8x128xf32> to vector<1x128xf32>
    %34 = vector.broadcast %33 : vector<1x128xf32> to vector<8x128xf32>
    %35 = arith.subf %34, %31 : vector<8x128xf32>
    %36 = math.exp %35 : vector<8x128xf32>
    %37 = arith.mulf %36, %26 : vector<8x128xf32>
    %cst_13 = arith.constant dense<0.000000e+00> : vector<8x128xf32>
    %38 = tpu.matmul %30, %37, %cst_13 {dimension_numbers = #tpu.dot_dimension_numbers<[1], [0], [0], [1], [0, 0, 1, 1], [], []>} : vector<8x8xf32>, vector<8x128xf32>, vector<8x128xf32> -> vector<8x128xf32>
    %39 = arith.addf %38, %37 : vector<8x128xf32>
    %40 = math.exp %32 : vector<8x128xf32>
    %c0_14 = arith.constant 0 : index
    %c0_15 = arith.constant 0 : index
    %c0_16 = arith.constant 0 : index
    %41 = vector.load %arg6[%c0_14, %c0_15, %c0_16] : memref<1x1x128xf32, #tpu.memory_space<vmem>>, vector<1x1x128xf32>
    %42 = vector.shape_cast %41 : vector<1x1x128xf32> to vector<1x128xf32>
    %43 = vector.broadcast %42 : vector<1x128xf32> to vector<8x128xf32>
    %44 = arith.mulf %40, %43 : vector<8x128xf32>
    %45 = arith.addf %39, %44 : vector<8x128xf32>
    %c0_17 = arith.constant 0 : index
    %c0_18 = arith.constant 0 : index
    %c0_19 = arith.constant 0 : index
    %46 = vector.load %arg7[%c0_17, %c0_18, %c0_19] : memref<1x8x128xf32, #tpu.memory_space<vmem>>, vector<1x8x128xf32>
    %47 = vector.shape_cast %46 : vector<1x8x128xf32> to vector<8x128xf32>
    %48 = vector.shape_cast %45 : vector<8x128xf32> to vector<1x8x128xf32>
    tpu.vector_store %arg7[%c0_17, %c0_18, %c0_19], %48 {strides = array<i32>} : memref<1x8x128xf32, #tpu.memory_space<vmem>>, vector<1x8x128xf32>,
    return
  }
  func.func @transform_0(%arg0: i32, %arg1: i32) -> (i32, i32, i32) {
    %c0_i32 = arith.constant 0 : i32
    %c0_i32_0 = arith.constant 0 : i32
    %c0_i32_1 = arith.constant 0 : i32
    return %arg0, %c0_i32, %c0_i32_0 : i32, i32, i32
  }
  func.func @transform_1(%arg0: i32, %arg1: i32) -> (i32, i32) {
    %c0_i32 = arith.constant 0 : i32
    %c0_i32_0 = arith.constant 0 : i32
    return %c0_i32, %arg1 : i32, i32
  }
  func.func @transform_2(%arg0: i32, %arg1: i32) -> (i32, i32) {
    %c0_i32 = arith.constant 0 : i32
    %c0_i32_0 = arith.constant 0 : i32
    return %c0_i32, %arg1 : i32, i32
  }
  func.func @transform_3(%arg0: i32, %arg1: i32) -> (i32, i32) {
    %c0_i32 = arith.constant 0 : i32
    %c0_i32_0 = arith.constant 0 : i32
    %c0_i32_1 = arith.constant 0 : i32
    return %c0_i32, %c0_i32_0 : i32, i32
  }
  func.func @transform_4(%arg0: i32, %arg1: i32) -> (i32, i32, i32) {
    %c0_i32 = arith.constant 0 : i32
    %c0_i32_0 = arith.constant 0 : i32
    return %arg0, %c0_i32, %arg1 : i32, i32, i32
  }
  func.func @transform_5(%arg0: i32, %arg1: i32) -> (i32, i32, i32) {
    %c0_i32 = arith.constant 0 : i32
    %c0_i32_0 = arith.constant 0 : i32
    return %arg0, %c0_i32, %arg1 : i32, i32, i32
  }
}

</mosaic_0001>

<bundles_post_ra>
// kernel: tpu_custom_call.1
= control target key start
LH: loop header
LB: loop body
LE: loop exit
PB: predicated region body
PF: predicated region fallthrough
CT: control target
= control target key end

     0   :  { %10 = vsyncpa [#allocation3], 0  ;;  %s1352_s0 = inlined_call_operand.hbm [shape: bf16[2,8,32], index: 0, kind: input, shape index: {}]   ;;  %s1353_s1 = inlined_call_operand.hbm [shape: bf16[32,384], index: 1, kind: input, shape index: {}]   ;;  %s1354_s2 = inlined_call_operand.vmem [shape: f32[1,384], index: 2, kind: input, shape index: {}]   ;;  %s1355_s3 = inlined_call_operand.vmem [shape: f32[8,8], index: 3, kind: input, shape index: {}]   ;;  %s1356_s4 = inlined_call_operand.vmem [shape: f32[2,1,128], index: 4, kind: input, shape index: {}]   ;;  %s1357_s5 = inlined_call_operand.hbm [shape: f32[2,8,128], index: 5, kind: output, shape index: {}]  }
   0x1   :  { %12 = vsyncpa [#allocation3 + $0x1], 0 }
   0x2   :  { %13 = vsyncpa [#allocation6], 0 }
   0x3   :  { %14 = vsyncpa [#allocation4], 0 }
   0x4   :  { %16 = vsyncpa [#allocation4 + $0x1], 0  ;;  %s1123_s18 = smov 0   ;;  %s1125_s19 = smov 0  }
   0x5   :  { %s1127_s20 = smov 0   ;;  %s1129_s21 = smov 0  }
   0x6   :  { %s1131_s22 = smov 0   ;;  %s1133_s23 = smov 0  }
   0x7 LB: > { %s783_s24 = sadd.s32 4294967295, %s1083_s23   ;;  %s784_s25 = sadd.s32 4294967294, %s1083_s23   ;;  %s1083_s23 = sphi %s1133_s23, %s22_s23   ;;  %s1079_s22 = sphi %s1131_s22, %s1381_s22   ;;  %s1075_s21 = sphi %s1129_s21, %s1380_s21   ;;  %s1071_s20 = sphi %s1127_s20, %s1379_s20   ;;  %s1067_s19 = sphi %s1125_s19, %s1378_s19   ;;  %s1063_s18 = sphi %s1123_s18, %s1377_s18  }
   0x8   : > { %p54_p0 = scmp.ne.s32.totalorder %s1067_s19, %s1063_s18  ;;  %p1157_p1 = scmp.eq.s32.totalorder %s783_s24, 0 }
   0x9   : > { %p1161_p2 = scmp.eq.s32.totalorder %s783_s24, 1  ;;  %p187_p3 = scmp.eq.s32.totalorder %s784_s25, 1 }
   0xa   : > { %s1362_s26 = scalar_select %p1157_p1, 1, 0 }
   0xb   : > { %s1363_s27 = scalar_select %p1161_p2, 1, 0 }
   0xc   : > { %p1167_p4 = por %p1157_p1, %p54_p0  ;;  %p785_p5 = scmp.ge.s32.totalorder %s1083_s23, 1 }
   0xd   : > { %p1172_p6 = por %p187_p3, %p54_p0  ;;  %p194_p7 = scmp.lt.s32.totalorder %s1083_s23, 3 }
   0xe   : > { %s1364_s28 = scalar_select %p1167_p4, 1, 0 }
   0xf   : > { %s1365_s29 = scalar_select %p1172_p6, 1, 0 }
  0x10   : > { %p1177_p8 = pnand %p785_p5, %p194_p7  ;;  %s1085_s6 = smov [#allocation5]  }
  0x11   : > { %s209_s7 = sshll.u32 %s1085_s6, 4  ;;  %s34_s9 = sadd.s32 1, %s1079_s22  ;;  %s210_s7 = int_to_ptr.vmem [resolvable:$true] %s209_s7 }
  0x12   : > { %s1366_s30 = scalar_select %p1177_p8, 1, 0 }
  0x13   : > { %p845_p9 = pneg %p1177_p8  ;;  %s939_s12 = scalar_lea.hbm %s1353_s1, 768 }
  0x14   : > { %p940_p12 = scmp.ne.s32.totalorder %s1353_s1, %s939_s12  ;;  %p946_p5 = scmp.lt.u32.totalorder %s939_s12, %s1353_s1 }
  0x15   : > { %p1186_p11 = pnand %p845_p9, %p1157_p1 }
  0x17   : > { %p941_p13 = pneg %p1186_p11 }
  0x19   : > { %p942_p0 = pnand %p941_p13, %p940_p12 }
  0x1b   : > { %p943_p3 = pneg %p942_p0 }
  0x1d   : > { %p948_p7 = pnand %p946_p5, %p943_p3 }
  0x1f   : > { %951 = shalt.err (!%p948_p7)
}
  0x20   : > { %s952_s17 = scalar_lea.vmem %s210_s7, 768  ;;  %p960_p1 = scmp.lt.s32.totalorder %s210_s7, %s210_s7 }
  0x21   : > { %p953_p9 = scmp.ne.s32.totalorder %s210_s7, %s952_s17  ;;  %p961_p4 = scmp.lt.s32.totalorder %s952_s17, %s952_s17 }
  0x23   : > { %p955_p10 = pnand %p953_p9, %p941_p13  ;;  %p962_p8 = por %p961_p4, %p960_p1 }
  0x25   : > { %p956_p6 = pneg %p955_p10 }
  0x27   : > { %p963_p2 = pnand %p962_p8, %p956_p6 }
  0x29   : > { %966 = shalt.err (!%p963_p2)
}
  0x2a   : > { %s1086_s24 = smov 192   ;;  %s1087_s25 = smov 12  }
  0x2b   : > { %848 = dma.hbm_to_vmem [thread:$0]  (!%p1186_p11), %s1353_s1, 768, %s210_s7, [#allocation6], %s1086_s24, %s1086_s24, %s1087_s25  }
  0x2c   : > { %p36_p1 = scmp.ge.s32.totalorder %s34_s9, 2  ;;  %s41_s11 = sadd.s32 1, %s1071_s20 }
  0x2d   : > { %p48_p2 = scmp.ne.s32.totalorder %s1071_s20, %s1067_s19  ;;  %p49_p4 = scmp.eq.s32.totalorder %s1083_s23, 0 }
  0x2e   : > { %s1383_s9 = smov (%p36_p1, %s34_s9), 0  ;;  %p1369_p8 = scmp.ne.s32.totalorder %s1363_s27, 0 }
  0x2f   : > { %p1213_p6 = por %p49_p4, %p48_p2  ;;  %s38_s8 = ssub.s32 %s1079_s22, %s1383_s9 }
  0x30   : > { %p1219_p10 = por %p1369_p8, %p48_p2  ;;  %p858_p12 = scmp.lt.s32.totalorder %s1083_s23, 2 }
  0x31   : > { %p39_p11 = scmp.eq.s32.totalorder %s38_s8, 0  ;;  %s234_s7 = sand.u32 1, %s1071_s20  }
  0x32   : > { %s789_s14 = sshll.u32 %s234_s7, 2  ;;  %s790_s16 = sshll.u32 %s1079_s22, 6 }
  0x33   : > { %s1228_s15 = scalar_select %p39_p11, %s1071_s20, %s41_s11  }
  0x34   : > { %s1234_s25 = scalar_lea.hbm %s1352_s0, %s790_s16  ;;  %s238_s27 = scalar_lea.vmem [#allocation2], %s789_s14 }
  0x35   : > { %s245_s6 = sshll.u32 %s238_s27, 4  ;;  %p1240_p13 = pnand %p858_p12, %p1213_p6  ;;  %s1236_s6 = int_to_ptr.vmem [resolvable:$true] %s245_s6 }
  0x36   : > { %s235_s11 = scalar_lea.sflag [#allocation3], %s234_s7  ;;  %s967_s8 = scalar_lea.hbm %s1234_s25, 64 }
  0x37   : > { %p968_p0 = scmp.ne.s32.totalorder %s1234_s25, %s967_s8  ;;  %p969_p3 = pneg %p1240_p13 }
  0x38   : > { %s972_s17 = scalar_lea.hbm %s1352_s0, 128  ;;  %p973_p9 = scmp.lt.u32.totalorder %s1234_s25, %s1352_s0 }
  0x39   : > { %p970_p5 = pnand %p969_p3, %p968_p0  ;;  %p974_p1 = scmp.lt.u32.totalorder %s972_s17, %s967_s8 }
  0x3a   : > { %p976_p4 = scmp.lt.u32.totalorder %s967_s8, %s1234_s25 }
  0x3b   : > { %p971_p7 = pneg %p970_p5  ;;  %p975_p2 = por %p974_p1, %p973_p9 }
  0x3d   : > { %p977_p6 = por %p976_p4, %p975_p2 }
  0x3f   : > { %p978_p8 = pnand %p977_p6, %p971_p7 }
  0x41   : > { %981 = shalt.err (!%p978_p8)
}
  0x42   : > { %s982_s7 = scalar_lea.vmem %s1236_s6, 64  ;;  %s1088_s27 = smov [#allocation2]  }
  0x43   : > { %p983_p12 = scmp.ne.s32.totalorder %s1236_s6, %s982_s7  ;;  %s987_s14 = sshll.u32 %s1088_s27, 4  ;;  %s988_s14 = int_to_ptr.vmem [resolvable:$false] %s987_s14 }
  0x44   : > { %s989_s16 = scalar_lea.vmem %s988_s14, 128  ;;  %p990_p5 = scmp.lt.s32.totalorder %s1236_s6, %s988_s14 }
  0x45   : > { %p985_p11 = pnand %p983_p12, %p969_p3  ;;  %p991_p9 = scmp.lt.s32.totalorder %s989_s16, %s982_s7 }
  0x47   : > { %p986_p0 = pneg %p985_p11  ;;  %p992_p1 = por %p991_p9, %p990_p5 }
  0x49   : > { %p993_p2 = pnand %p992_p1, %p986_p0 }
  0x4b   : > { %996 = shalt.err (!%p993_p2)
}
  0x4c   : > { %852 = dma.hbm_to_vmem [thread:$0]  (!%p1240_p13), %s1234_s25, 64, %s1236_s6, %s235_s11  }
  0x4d   : > { %p1372_p7 = scmp.ne.s32.totalorder %s1366_s30, 0 }
  0x4e   : > { %s1272_s8 = sand.u32 (!%p1372_p7), 1, %s1067_s19   ;;  %p1373_p3 = scmp.ne.s32.totalorder (!%p1372_p7), %s1364_s28, 0 }
  0x4f   : > { %263 = sbr.rel (%p1372_p7) target bundleno = 838 (0x346), region = 40  ;;  %s792_s17 = sshll.u32 (!%p1372_p7), %s1272_s8, 2 }
  0x50   : > { %s266_s12 = scalar_lea.sflag (!%p1372_p7), [#allocation3], %s1272_s8  ;;  %s269_s24 = scalar_lea.vmem (!%p1372_p7), [#allocation2], %s792_s17 }
  0x56   : > { %1050 = dma.done.wait (%p1373_p3), %s266_s12, 64  }
  0x57   : > { %1052 = vsyncadd (%p1373_p3), %s266_s12, 4294967232  ;;  %p1374_p4 = scmp.ne.s32.totalorder %s1362_s26, 0 }
  0x59   : > { %1054 = dma.done.wait (%p1374_p4), [#allocation6], 768  }
  0x5a   : > { %1056 = vsyncadd (%p1374_p4), [#allocation6], 4294966528  ;;  %v1089_v0 = vmov 0   ;;  %v1090_v1 = vmov 0.0   ;;  %vm1091_vm0 = vmmov 0   ;;  %vm381_vm1 = vcmask 261120  }
  0x5b   : > { %417 = vmatprep.mubr.bf16.mxu0 %v1089_v0  ;;  %819 = vmatprep.subr.bf16.mxu1 %v1090_v1  ;;  %v915_v2 = vld [vmem:[#allocation5 + $0x4] ss:$12 sps:$4 sm:$0xff]   ;;  %v917_v3 = vld [vmem:[#allocation5] ss:$12 sps:$4 sm:$0xff]   ;;  %v918_v4 = vld [vmem:[#allocation5 + $0x1c] ss:$12 sps:$4 sm:$0xff]   ;;  %v334_v9 = vlaneseq }
  0x5c   : > { %823 = vmatprep.mubr.msk.bf16.mxu1 %vm1091_vm0, %v1090_v1  ;;  %385 = vmatprep.subr.bf16.mxu0 %v915_v2  ;;  %v920_v5 = vld [vmem:[#allocation5 + $0x18] ss:$12 sps:$4 sm:$0xff]   ;;  %v921_v6 = vld [vmem:[#allocation5 + $0x8] ss:$12 sps:$4 sm:$0xff]   ;;  %v922_v7 = vld [vmem:[#allocation5 + $0x20] ss:$12 sps:$4 sm:$0xff]  }
  0x5d   : > { %386 = vmatpush1.bf16.msra.mxu0 %v917_v3  ;;  %820 = vmatpush3.bf16.msra.mxu1 %v921_v6  ;;  %v323_v8 = vld [vmem:[%s269_s24] sm:$0xf]  ;;  %v335_v10 = vshrl.u32 %v334_v9, 7  ;;  %vm488_vm2 = vcmask 64512   ;;  %p316_p13 = scmp.lt.s32.totalorder %s1075_s21, 1  ;;  %s794_s10 = sshll.u32 %s1272_s8, 3 }
  0x5e   : > { %387 = vmatprep.subr.bf16.mxu0 %v918_v4  ;;  %821 = vmatprep.subr.bf16.mxu1 %v1090_v1  ;;  %v332_v12 = vld [vmem:[%s1354_s2] sm:$0x7]  ;;  %s809_s14 = sshll.u32 %s1075_s21, 7  ;;  %s309_s16 = scalar_lea.vmem [#allocation7], %s794_s10 }
  0x5f   : > { %v336_v11 = vsub.s32 0, %v335_v10  ;;  %v340_v13 = vsub.s32 1, %v335_v10  ;;  %v344_v36 = vsub.s32 2, %v335_v10  ;;  %v487_v46 = vld [vmem:[%s1355_s3] sm:$0xff]  ;;  %v565_v47 = vsub.s32 7, %v335_v10  ;;  %s317_s6 = scalar_select %p316_p13, %s1075_s21, 1 }
  0x60   : > { %s668_s17 = sshll.u32 %s309_s16, 4  ;;  %s1303_s26 = scalar_lea.hbm %s1357_s5, %s809_s14  ;;  %s1305_s17 = int_to_ptr.vmem [resolvable:$true] %s668_s17 }
  0x61   : > { %388 = vmatpush1.bf16.msra.mxu0 %v920_v5  ;;  %822 = vmatpush3.bf16.msra.mxu1 %v922_v7  ;;  %v337_v14 = vrot.slane %v332_v12, %v336_v11  ;;  %v341_v15 = vrot.slane %v332_v12, %v340_v13  ;;  %v345_v37 = vrot.slane %v332_v12, %v344_v36  ;;  %s321_s27 = scalar_lea.vmem %s1356_s4, %s317_s6  ;;  %s654_s28 = scalar_lea.sflag [#allocation4], %s1272_s8 }
  0x62   : > { %827 = vmatprep.subr.mxu0 %v1090_v1  ;;  %832 = vmatprep.subr.mxu1 %v1090_v1  ;;  %v807_v58 = vld [vmem:[%s321_s27] ss:$0 sm:$0xff]  ;;  %s997_s30 = scalar_lea.vmem %s1305_s17, 128  ;;  %s1092_s21 = smov [#allocation7]  }
  0x63   : > { %p998_p6 = scmp.ne.s32.totalorder %s1305_s17, %s997_s30  ;;  %s1001_s25 = sshll.u32 %s1092_s21, 4  ;;  %s1002_s25 = int_to_ptr.vmem [resolvable:$false] %s1001_s25 }
  0x64   : > { %801 = vmatmul.mubr.msk.bf16.vlgmr.msra.gmra.mrb[0].mxu0 %vm381_vm1, %v323_v8  ;;  %824 = vmatmul.mubr.msk.bf16.vlgmr.msra.gmra.mrb[0].mxu1 %vm381_vm1, %v323_v8  ;;  %s1003_s6 = scalar_lea.vmem %s1002_s25, 256  ;;  %p1004_p11 = scmp.lt.s32.totalorder %s1305_s17, %s1002_s25 }
  0x65   : > { %829 = vmatprep.mubr.msk.f32.mxu0 %vm1091_vm0, %v1090_v1  ;;  %834 = vmatprep.mubr.msk.f32.mxu1 %vm1091_vm0, %v1090_v1  ;;  %p999_p8 = pnand %p998_p6, %p1219_p10  ;;  %p1005_p0 = scmp.lt.s32.totalorder %s1003_s6, %s997_s30 }
  0x67   : > { %p1000_p12 = pneg %p999_p8  ;;  %p1006_p5 = por %p1005_p0, %p1004_p11 }
  0x69   : > { %p1007_p9 = pnand %p1006_p5, %p1000_p12 }
 0x137   : > { %v419_v16 = vpop.f32.mrb[0].mxu0  ;;  %v460_v21 = vpop.f32.mrb[0].mxu1 }
 0x138   : > { %v420_v17 = vadd.f32 %v419_v16, %v337_v14  ;;  %v421_v18 = vpop.f32.mrb[1].mxu0  ;;  %v825_v24 = vpop.f32.mrb[1].mxu1  ;;  %v461_v38 = vadd.f32 %v460_v21, %v345_v37 }
 0x139   : > { %v422_v19 = vadd.f32 %v421_v18, %v341_v15  ;;  %v423_v20 = vpop.f32.mrb[2].mxu0  ;;  %v463_v26 = vpop.f32.mrb[2].mxu1 }
 0x13a   : > { %v803_v22 = vmul.f32 -1.442695, %v420_v17  ;;  %v424_v23 = vpop.f32.mrb[3].mxu0  ;;  %v826_v27 = vpop.f32.mrb[3].mxu1 }
 0x13b   : > { %v804_v25 = vmul.f32 -1.442695, %v422_v19 }
 0x13c   : > { %923 = vpow2.f32 %v803_v22 }
 0x13d   : > { %925 = vpow2.f32 %v804_v25 }
 0x146   : > { %v924_v28 = vpop.eup %923 }
 0x147   : > { %v926_v29 = vpop.eup %925  ;;  %v469_v30 = vadd.f32 1.0, %v924_v28 }
 0x148   : > { %v475_v31 = vadd.f32 1.0, %v926_v29 }
 0x149   : > { %927 = vrcp.f32 %v469_v30 }
 0x14a   : > { %929 = vrcp.f32 %v475_v31 }
 0x153   : > { %v928_v32 = vpop.eup %927 }
 0x154   : > { %v930_v33 = vpop.eup %929 }
 0x155   : > { %v478_v34 = vadd.f32 %v930_v33, %v928_v32 }
 0x157   : > { %v479_v35 = vadd.f32 1e-08, %v478_v34 }
 0x159   : > { %931 = vrcp.f32 %v479_v35 }
 0x163   : > { %v932_v39 = vpop.eup %931 }
 0x164   : > { %v482_v40 = vmul.f32 %v932_v39, %v930_v33  ;;  %v481_v41 = vmul.f32 %v932_v39, %v928_v32 }
 0x166   : > { %v483_v42 = vmul.f32 %v482_v40, %v461_v38  ;;  %v484_v43 = vadd.f32 1e-08, %v481_v41 }
 0x168   : > { %933 = vlog2.f32 %v484_v43 }
 0x172   : > { %v934_v44 = vpop.eup %933 }
 0x173   : > { %v486_v45 = vmul.f32 0.6931472, %v934_v44 }
 0x175   : > { %828 = vmatpush3.msra.mxu0 %v486_v45 }
 0x176   : > { %830 = vmatmul.mubr.msk.f32.vlgmr.msra.gmra.mrb[4].mxu0 %vm488_vm2, %v487_v46 }
 0x249   : > { %v558_v48 = vpop.f32.mrb[4].mxu0 }
 0x24a   : > { %v562_v49 = vadd.f32 %v558_v48, %v486_v45  ;;  %v831_v50 = vpop.f32.mrb[5].mxu0 }
 0x24c   : > { %v566_v51 = vrot.slane %v562_v49, %v565_v47  ;;  %v641_v56 = vmul.f32 1.442695, %v562_v49 }
 0x24e   : > { %v567_v52 = vsub.f32 %v566_v51, %v558_v48 }
 0x250   : > { %v568_v53 = vmul.f32 1.442695, %v567_v52 }
 0x252   : > { %935 = vpow2.f32 %v568_v53 }
 0x253   : > { %937 = vpow2.f32 %v641_v56 }
 0x25c   : > { %v936_v54 = vpop.eup %935 }
 0x25d   : > { %v570_v55 = vmul.f32 %v936_v54, %v483_v42  ;;  %v938_v57 = vpop.eup %937 }
 0x25e   : > { %v650_v61 = vmul.f32 %v938_v57, %v807_v58 }
 0x25f   : > { %833 = vmatpush3.msra.mxu1 %v570_v55 }
 0x260   : > { %835 = vmatmul.mubr.msk.f32.vlgmr.msra.gmra.mrb[4].mxu1 %vm488_vm2, %v487_v46 }
 0x333   : > { %v637_v59 = vpop.f32.mrb[4].mxu1 }
 0x334   : > { %v638_v60 = vadd.f32 %v637_v59, %v570_v55  ;;  %v836_v62 = vpop.f32.mrb[5].mxu1 }
 0x336   : > { %v651_v63 = vadd.f32 %v650_v61, %v638_v60 }
 0x338   : > { %652 = vst [vmem:[%s309_s16] sm:$0xff] %v651_v63 }
 0x339   : > { %1010 = shalt.err (!%p1007_p9)
}
 0x33a   : > { %s1011_s8 = scalar_lea.hbm %s1303_s26, 128  ;;  %s1015_s7 = scalar_lea.hbm %s1357_s5, 256 }
 0x33b   : > { %p1012_p1 = scmp.ne.s32.totalorder %s1303_s26, %s1011_s8  ;;  %p1016_p3 = scmp.lt.u32.totalorder %s1303_s26, %s1357_s5 }
 0x33c   : > { %p1017_p4 = scmp.lt.u32.totalorder %s1015_s7, %s1011_s8  ;;  %p1019_p6 = scmp.lt.u32.totalorder %s1011_s8, %s1303_s26 }
 0x33d   : > { %p1013_p2 = pnand %p1012_p1, %p1219_p10 }
 0x33e   : > { %p1018_p13 = por %p1017_p4, %p1016_p3 }
 0x33f   : > { %p1014_p7 = pneg %p1013_p2 }
 0x340   : > { %p1020_p8 = por %p1019_p6, %p1018_p13 }
 0x342   : > { %p1021_p12 = pnand %p1020_p8, %p1014_p7 }
 0x344   : > { %1024 = shalt.err (!%p1021_p12)
}
 0x345   : > { %843 = dma.vmem_to_hbm [thread:$0]  (%p1219_p10), %s1305_s17, 128, %s1303_s26, %s654_s28  }
 0x346 PF: > { %s680_s16 = sand.u32 1, %s1063_s18   ;;  %p1375_p11 = scmp.ne.s32.totalorder %s1365_s29, 0 }
 0x347   : > { %p1376_p0 = scmp.ge.s32.totalorder %s1083_s23, 2  ;;  %s681_s12 = scalar_lea.sflag [#allocation4], %s680_s16 }
 0x349   : > { %p854_p5 = pnand %p1376_p0, %p1375_p11 }
 0x34b   : > { %1058 = dma.done.wait (!%p854_p5), %s681_s12, 128  }
 0x34c   : > { %1060 = vsyncadd (!%p854_p5), %s681_s12, 4294967168  ;;  %s22_s23 = sadd.s32 1, %s1083_s23   ;;  %s1377_s18 = smov %s1067_s19 }
 0x34d   : > { %p19_p9 = scmp.ge.s32.totalorder %s22_s23, 4   ;;  %s1378_s19 = smov %s1071_s20 }
 0x34e   : > { %s1379_s20 = smov %s1228_s15  ;;  %s1380_s21 = smov %s1079_s22 }
 0x34f   : > { %s1381_s22 = smov %s1383_s9  ;;  %21 = sbr.rel (!%p19_p9) target bundleno = 7 (0x7), region = 96 }
 0x356   :  { %686 = vsyncpa [#allocation3], 1 }
 0x357   :  { %688 = vsyncpa [#allocation3 + $0x1], 1 }
 0x358   :  { %689 = vsyncpa [#allocation6], 1 }
 0x359   :  { %690 = vsyncpa [#allocation4], 1 }
 0x35a   :  { %692 = vsyncpa [#allocation4 + $0x1], 1 }

</bundles_post_ra>
